<compile_context>
chip_gen: v7x
topology: tpu7x:2x2x1
jax: 0.10.0
libtpu: 0.0.40
codegen_flags: <defaults>
</compile_context>

<pallas_src>
import math

import jax
import jax.numpy as jnp
from jax.experimental import pallas as pl
from jax.experimental.pallas import tpu as pltpu


def rawnet_kernel(x_ref, w1_ref, b1_ref, w2_ref, b2_ref, w3_ref, b3_ref,
                  out_ref):
    # x_ref : (2, TN)        batch tile, batch on lanes
    # w1    : (H, 2)  b1: (H, 1)
    # w2    : (H, H)  b2: (H, 1)
    # w3    : (1, H)  b3: (1, 1)
    # out   : (1, TN)
    x0 = x_ref[0:1, :]                        # (1, TN)
    x1 = x_ref[1:2, :]                        # (1, TN)
    w1 = w1_ref[...]                          # (H, 2)

    # layer 1: K=2 "matmul" as two VPU FMAs (skip the MXU round-trip)
    h1 = jnp.tanh(w1[:, 0:1] * x0 + w1[:, 1:2] * x1 + b1_ref[...])   # (H, TN)

    # layer 2: (H, H) @ (H, TN) on the MXU, f32 accumulation
    h2 = jnp.tanh(
        jnp.dot(w2_ref[...], h1, preferred_element_type=jnp.float32)
        + b2_ref[...])                                               # (H, TN)

    # output layer: (1, H) @ (H, TN) -> lane-dense (1, TN) store
    logits = (jnp.dot(w3_ref[...], h2, preferred_element_type=jnp.float32)
              + b3_ref[...])                                         # (1, TN)
    out_ref[...] = jax.nn.sigmoid(logits)


def rawnet_forward(x, w1, b1, w2, b2, w3, b3, *, tile_n=1024):
    """x: (N, 2) f32. Weights in PyTorch layout: w=(out, in), b=(out, 1).
    Returns (N, 1) f32, matching RawNet.forward."""
    n = x.shape[0]
    h = w1.shape[0]

    # tile on the lane axis: multiple of 128, no bigger than needed
    tile_n = max(128, min(tile_n, pl.cdiv(n, 128) * 128))
    n_pad = pl.cdiv(n, tile_n) * tile_n
    grid = (n_pad // tile_n,)

    # transpose to (features, batch) and zero-pad the batch to the tile grid
    x_t = jnp.zeros((2, n_pad), jnp.float32).at[:, :n].set(x.T)

    resident = lambda shape: pl.BlockSpec(shape, lambda i: (0, 0))

    out_t = pl.pallas_call(
        rawnet_kernel,
        out_shape=jax.ShapeDtypeStruct((1, n_pad), jnp.float32),
        grid=grid,
        in_specs=[
            pl.BlockSpec((2, tile_n), lambda i: (0, i)),   # x tile
            resident((h, 2)),                              # w1
            resident((h, 1)),                              # b1
            resident((h, h)),                              # w2
            resident((h, 1)),                              # b2
            resident((1, h)),                              # w3
            resident((1, 1)),                              # b3
        ],
        out_specs=pl.BlockSpec((1, tile_n), lambda i: (0, i)),
        compiler_params=pltpu.CompilerParams(
            dimension_semantics=("parallel",)),
    )(x_t, w1, b1, w2, b2, w3, b3)

    return out_t[0, :n].reshape(n, 1)


def init_linear_params(key, fan_in, fan_out):
    """Mirror PyTorch nn.Linear default init: U(-1/sqrt(fan_in), 1/sqrt(fan_in)).
    Weight stored as (out, in) (PyTorch layout), bias as (out, 1)."""
    kw, kb = jax.random.split(key)
    bound = 1.0 / math.sqrt(fan_in)
    w = jax.random.uniform(kw, (fan_out, fan_in), jnp.float32, -bound, bound)
    b = jax.random.uniform(kb, (fan_out, 1), jnp.float32, -bound, bound)
    return w, b


if __name__ == "__main__":
    num_hid = 32
    batch = 3000          # non-multiple of the tile -> exercises padding + grid

    key = jax.random.PRNGKey(0)
    kx, k1, k2, k3 = jax.random.split(key, 4)

    # input: (batch, 2) — spiral (x, y) coordinates
    x = jax.random.normal(kx, (batch, 2), jnp.float32)

    w1, b1 = init_linear_params(k1, 2, num_hid)        # in_to_hid1
    w2, b2 = init_linear_params(k2, num_hid, num_hid)  # hid1_to_hid2
    w3, b3 = init_linear_params(k3, num_hid, 1)        # hid2_to_out

    out = rawnet_forward(x, w1, b1, w2, b2, w3, b3, tile_n=1024)
    out = jax.block_until_ready(out)

    # pure-JAX reference (PyTorch nn.Linear semantics: x @ W.T + b)
    h1_ref = jnp.tanh(x @ w1.T + b1.T)
    h2_ref = jnp.tanh(h1_ref @ w2.T + b2.T)
    ref = jax.nn.sigmoid(h2_ref @ w3.T + b3.T)

    assert out.shape == (batch, 1)
    assert jnp.allclose(out, ref, atol=1e-5, rtol=1e-5)

    print("KERNEL_OK")
</pallas_src>

<mosaic_0001>
module attributes {stable_mosaic.version = 11 : i64} {
  func.func @rawnet_kernel(%arg0: i32, %arg1: memref<2x1024xf32, #tpu.memory_space<vmem>>, %arg2: memref<32x2xf32, #tpu.memory_space<vmem>>, %arg3: memref<32x1xf32, #tpu.memory_space<vmem>>, %arg4: memref<32x32xf32, #tpu.memory_space<vmem>>, %arg5: memref<32x1xf32, #tpu.memory_space<vmem>>, %arg6: memref<1x32xf32, #tpu.memory_space<vmem>>, %arg7: memref<1x1xf32, #tpu.memory_space<vmem>>, %arg8: memref<1x1024xf32, #tpu.memory_space<vmem>>) attributes {dimension_semantics = [#tpu.dimension_semantics<parallel>], iteration_bounds = array<i64: 3>, scalar_prefetch = 0 : i64, scratch_operands = 0 : i64, tpu.core_type = #tpu.core_type<tc>, window_params = [{transform_indices = @transform_0, window_bounds = array<i64: 2, 1024>}, {pipeline_mode = #tpu.pipeline_mode<synchronous>, transform_indices = @transform_1, window_bounds = array<i64: 32, 2>}, {pipeline_mode = #tpu.pipeline_mode<synchronous>, transform_indices = @transform_2, window_bounds = array<i64: 32, 1>}, {pipeline_mode = #tpu.pipeline_mode<synchronous>, transform_indices = @transform_3, window_bounds = array<i64: 32, 32>}, {pipeline_mode = #tpu.pipeline_mode<synchronous>, transform_indices = @transform_4, window_bounds = array<i64: 32, 1>}, {pipeline_mode = #tpu.pipeline_mode<synchronous>, transform_indices = @transform_5, window_bounds = array<i64: 1, 32>}, {pipeline_mode = #tpu.pipeline_mode<synchronous>, transform_indices = @transform_6, window_bounds = array<i64: 1, 1>}, {transform_indices = @transform_7, window_bounds = array<i64: 1, 1024>}]} {
    %c0 = arith.constant 0 : index
    %c0_0 = arith.constant 0 : index
    %0 = vector.load %arg1[%c0, %c0_0] : memref<2x1024xf32, #tpu.memory_space<vmem>>, vector<1x1024xf32>
    %c1 = arith.constant 1 : index
    %c0_1 = arith.constant 0 : index
    %1 = vector.load %arg1[%c1, %c0_1] : memref<2x1024xf32, #tpu.memory_space<vmem>>, vector<1x1024xf32>
    %c0_2 = arith.constant 0 : index
    %c0_3 = arith.constant 0 : index
    %2 = vector.load %arg2[%c0_2, %c0_3] : memref<32x2xf32, #tpu.memory_space<vmem>>, vector<32x2xf32>
    %3 = vector.extract_strided_slice %2 {offsets = [0, 0], sizes = [32, 1], strides = [1, 1]} : vector<32x2xf32> to vector<32x1xf32>
    %4 = vector.broadcast %3 : vector<32x1xf32> to vector<32x1024xf32>
    %5 = vector.broadcast %0 : vector<1x1024xf32> to vector<32x1024xf32>
    %6 = arith.mulf %4, %5 : vector<32x1024xf32>
    %7 = vector.extract_strided_slice %2 {offsets = [0, 1], sizes = [32, 1], strides = [1, 1]} : vector<32x2xf32> to vector<32x1xf32>
    %8 = vector.broadcast %7 : vector<32x1xf32> to vector<32x1024xf32>
    %9 = vector.broadcast %1 : vector<1x1024xf32> to vector<32x1024xf32>
    %10 = arith.mulf %8, %9 : vector<32x1024xf32>
    %11 = arith.addf %6, %10 : vector<32x1024xf32>
    %c0_4 = arith.constant 0 : index
    %c0_5 = arith.constant 0 : index
    %12 = vector.load %arg3[%c0_4, %c0_5] : memref<32x1xf32, #tpu.memory_space<vmem>>, vector<32x1xf32>
    %13 = vector.broadcast %12 : vector<32x1xf32> to vector<32x1024xf32>
    %14 = arith.addf %11, %13 : vector<32x1024xf32>
    %15 = math.tanh %14 : vector<32x1024xf32>
    %c0_6 = arith.constant 0 : index
    %c0_7 = arith.constant 0 : index
    %16 = vector.load %arg4[%c0_6, %c0_7] : memref<32x32xf32, #tpu.memory_space<vmem>>, vector<32x32xf32>
    %cst = arith.constant dense<0.000000e+00> : vector<32x1024xf32>
    %17 = tpu.matmul %16, %15, %cst {dimension_numbers = #tpu.dot_dimension_numbers<[1], [0], [0], [1], [0, 0, 1, 1], [], []>} : vector<32x32xf32>, vector<32x1024xf32>, vector<32x1024xf32> -> vector<32x1024xf32>
    %c0_8 = arith.constant 0 : index
    %c0_9 = arith.constant 0 : index
    %18 = vector.load %arg5[%c0_8, %c0_9] : memref<32x1xf32, #tpu.memory_space<vmem>>, vector<32x1xf32>
    %19 = vector.broadcast %18 : vector<32x1xf32> to vector<32x1024xf32>
    %20 = arith.addf %17, %19 : vector<32x1024xf32>
    %21 = math.tanh %20 : vector<32x1024xf32>
    %c0_10 = arith.constant 0 : index
    %c0_11 = arith.constant 0 : index
    %22 = vector.load %arg6[%c0_10, %c0_11] : memref<1x32xf32, #tpu.memory_space<vmem>>, vector<1x32xf32>
    %cst_12 = arith.constant dense<0.000000e+00> : vector<1x1024xf32>
    %23 = tpu.matmul %22, %21, %cst_12 {dimension_numbers = #tpu.dot_dimension_numbers<[1], [0], [0], [1], [0, 0, 1, 1], [], []>} : vector<1x32xf32>, vector<32x1024xf32>, vector<1x1024xf32> -> vector<1x1024xf32>
    %c0_13 = arith.constant 0 : index
    %c0_14 = arith.constant 0 : index
    %24 = vector.load %arg7[%c0_13, %c0_14] : memref<1x1xf32, #tpu.memory_space<vmem>>, vector<1x1xf32>
    %25 = vector.broadcast %24 : vector<1x1xf32> to vector<1x1024xf32>
    %26 = arith.addf %23, %25 : vector<1x1024xf32>
    %27 = arith.negf %26 : vector<1x1024xf32>
    %28 = math.exp %27 : vector<1x1024xf32>
    %cst_15 = arith.constant 1.000000e+00 : f32
    %29 = vector.broadcast %cst_15 : f32 to vector<1x1024xf32>
    %30 = arith.addf %29, %28 : vector<1x1024xf32>
    %31 = arith.divf %29, %30 : vector<1x1024xf32>
    %c0_16 = arith.constant 0 : index
    %c0_17 = arith.constant 0 : index
    %32 = vector.load %arg8[%c0_16, %c0_17] : memref<1x1024xf32, #tpu.memory_space<vmem>>, vector<1x1024xf32>
    tpu.vector_store %arg8[%c0_16, %c0_17], %31 {strides = array<i32>} : memref<1x1024xf32, #tpu.memory_space<vmem>>, vector<1x1024xf32>,
    return
  }
  func.func @transform_0(%arg0: i32) -> (i32, i32) {
    %c0_i32 = arith.constant 0 : i32
    %c0_i32_0 = arith.constant 0 : i32
    return %c0_i32, %arg0 : i32, i32
  }
  func.func @transform_1(%arg0: i32) -> (i32, i32) {
    %c0_i32 = arith.constant 0 : i32
    %c0_i32_0 = arith.constant 0 : i32
    %c0_i32_1 = arith.constant 0 : i32
    return %c0_i32, %c0_i32_0 : i32, i32
  }
  func.func @transform_2(%arg0: i32) -> (i32, i32) {
    %c0_i32 = arith.constant 0 : i32
    %c0_i32_0 = arith.constant 0 : i32
    %c0_i32_1 = arith.constant 0 : i32
    return %c0_i32, %c0_i32_0 : i32, i32
  }
  func.func @transform_3(%arg0: i32) -> (i32, i32) {
    %c0_i32 = arith.constant 0 : i32
    %c0_i32_0 = arith.constant 0 : i32
    %c0_i32_1 = arith.constant 0 : i32
    return %c0_i32, %c0_i32_0 : i32, i32
  }
  func.func @transform_4(%arg0: i32) -> (i32, i32) {
    %c0_i32 = arith.constant 0 : i32
    %c0_i32_0 = arith.constant 0 : i32
    %c0_i32_1 = arith.constant 0 : i32
    return %c0_i32, %c0_i32_0 : i32, i32
  }
  func.func @transform_5(%arg0: i32) -> (i32, i32) {
    %c0_i32 = arith.constant 0 : i32
    %c0_i32_0 = arith.constant 0 : i32
    %c0_i32_1 = arith.constant 0 : i32
    return %c0_i32, %c0_i32_0 : i32, i32
  }
  func.func @transform_6(%arg0: i32) -> (i32, i32) {
    %c0_i32 = arith.constant 0 : i32
    %c0_i32_0 = arith.constant 0 : i32
    %c0_i32_1 = arith.constant 0 : i32
    return %c0_i32, %c0_i32_0 : i32, i32
  }
  func.func @transform_7(%arg0: i32) -> (i32, i32) {
    %c0_i32 = arith.constant 0 : i32
    %c0_i32_0 = arith.constant 0 : i32
    return %c0_i32, %arg0 : i32, i32
  }
}

</mosaic_0001>

<bundles_post_ra>
// kernel: tpu_custom_call.1
= control target key start
LH: loop header
LB: loop body
LE: loop exit
PB: predicated region body
PF: predicated region fallthrough
CT: control target
= control target key end

     0   :  { %s2432_s0 = inlined_call_operand.vmem [shape: f32[2,3072], index: 0, kind: input, shape index: {}]   ;;  %s2433_s1 = inlined_call_operand.vmem [shape: f32[32,2], index: 1, kind: input, shape index: {}]   ;;  %s2434_s2 = inlined_call_operand.vmem [shape: f32[32,1], index: 2, kind: input, shape index: {}]   ;;  %s2435_s3 = inlined_call_operand.vmem [shape: f32[32,32], index: 3, kind: input, shape index: {}]   ;;  %s2436_s4 = inlined_call_operand.vmem [shape: f32[32,1], index: 4, kind: input, shape index: {}]   ;;  %s2437_s5 = inlined_call_operand.vmem [shape: f32[1,32], index: 5, kind: input, shape index: {}]   ;;  %s2438_s6 = inlined_call_operand.<no memory space> [shape: f32[1,1], index: 6, kind: input, shape index: {}]   ;;  %s2439_s7 = inlined_call_operand.hbm [shape: f32[1,3072], index: 7, kind: output, shape index: {}]  }
   0x1   :  { %v12_v0 = vstv %s2438_s6 }
   0x2   :  { %13 = vst [vmem:[#allocation2] sm:$0x1] %v12_v0 }
   0x3   :  { %14 = vsyncpa [#allocation4], 0 }
   0x4   :  { %16 = vsyncpa [#allocation4 + $0x1], 0  ;;  %s1926_s26 = smov 0   ;;  %s1928_s27 = smov 0  }
   0x5   :  { %s1930_s28 = smov 0   ;;  %s1932_s29 = smov 0  }
   0x6 LB: > { %s1947_s6 = sadd.s32 4294967295, %s1876_s29   ;;  %s1499_s30 = sadd.s32 4294967294, %s1876_s29   ;;  %s1876_s29 = sphi %s1932_s29, %s2458_s29   ;;  %s1872_s28 = sphi %s1930_s28, %s2457_s28   ;;  %s1868_s27 = sphi %s1928_s27, %s2456_s27   ;;  %s1864_s26 = sphi %s1926_s26, %s2455_s26  }
   0x7   : > { %s1951_s8 = sadd.s32 1, %s1876_s29   ;;  %s181_s9 = sadd.s32 1, %s1872_s28 }
   0x8   : > { %s178_s10 = ssub.s32 %s1876_s29, %s1951_s8  ;;  %p191_p0 = scmp.ne.s32.totalorder %s1872_s28, %s1868_s27 }
   0x9   : > { %p179_p1 = scmp.eq.s32.totalorder %s178_s10, 0  ;;  %p192_p2 = scmp.eq.s32.totalorder %s1947_s6, 2 }
   0xa   : > { %p197_p3 = scmp.ne.s32.totalorder %s1868_s27, %s1864_s26  ;;  %p198_p4 = scmp.eq.s32.totalorder %s1499_s30, 2 }
   0xb   : > { %s1962_s11 = scalar_select %p179_p1, %s1872_s28, %s181_s9  }
   0xc   : > { %p1964_p5 = por %p192_p2, %p191_p0  ;;  %p1968_p6 = por %p198_p4, %p197_p3 }
   0xd   : > { %p1502_p7 = scmp.ge.s32.totalorder %s1876_s29, 1  ;;  %p243_p8 = scmp.lt.s32.totalorder %s1876_s29, 4 }
   0xf   : > { %p244_p9 = pnand %p1502_p7, %p243_p8 }
  0x11   : > { %247 = sbr.rel (%p244_p9) target bundleno = 730 (0x2da), region = 48 }
  0x18   : > { %v287_v1 = vld [vmem:[%s2433_s1 + $0x10] sm:$0xff]  ;;  %v285_v2 = vld [vmem:[%s2433_s1] sm:$0xff]  ;;  %v1878_v3 = vmov 1   ;;  %v286_v4 = vld [vmem:[%s2433_s1 + $0x8] sm:$0xff]  ;;  %v1879_v5 = vmov 0   ;;  %v2440_v16 = vmov 0.0   ;;  %v310_v17 = vlaneseq }
  0x19   : > { %1650 = vset.pattern.permute.xlu0 %v1878_v3  ;;  %1648 = vset.pattern.permute.xlu1 %v1878_v3  ;;  %v288_v6 = vld [vmem:[%s2433_s1 + $0x18] sm:$0xff]  ;;  %v504_v7 = vld [vmem:[%s2434_s2 + $0x8] sm:$0xff]  ;;  %v503_v8 = vld [vmem:[%s2434_s2] sm:$0xff]  ;;  %s1504_s23 = sshll.u32 %s1947_s6, 3  ;;  %vm619_vm0 = vcmask 261120   ;;  %s1540_s25 = sshll.u32 %s1947_s6, 7 }
  0x1a   : > { %391 = vperm.xlu0 %1650, %v287_v1   ;;  %383 = vperm.xlu1 %1648, %v285_v2   ;;  %v595_v9 = vld [vmem:[%s2436_s4] sm:$0xff]  ;;  %v505_v10 = vld [vmem:[%s2434_s2 + $0x10] sm:$0xff]  ;;  %v506_v12 = vld [vmem:[%s2434_s2 + $0x18] sm:$0xff]  ;;  %p276_p10 = scmp.lt.s32.totalorder %s1504_s23, 23  ;;  %v2013_v18 = vshrl.u32 %v310_v17, 7  ;;  %s2390_s15 = scalar_lea.hbm %s2439_s7, %s1540_s25 }
  0x1b   : > { %v597_v11 = vld [vmem:[%s2436_s4 + $0x10] sm:$0xff]  ;;  %v1021_v13 = vld [vmem:[#allocation2] sm:$0x1]  ;;  %v596_v14 = vld [vmem:[%s2436_s4 + $0x8] sm:$0xff]  ;;  %696 = vmatprep.mubr.f32.mxu0 %v2440_v16  ;;  %785 = vmatprep.mubr.f32.mxu1 %v2440_v16  ;;  %s1882_s6 = smov [#allocation3]  }
  0x1c   : > { %v598_v15 = vld [vmem:[%s2436_s4 + $0x18] sm:$0xff]  ;;  %s2460_s23 = smov (!%p276_p10, %s1504_s23), 23  ;;  %2446 = vst [vmem:[#allocation6_spill] sm:$0xff] %v2013_v18  ;;  %v328_v19 = vsub.s32 4, %v2013_v18  ;;  %v336_v20 = vsub.s32 6, %v2013_v18  ;;  %v2021_v21 = vsub.s32 0, %v2013_v18 }
  0x1d   : > { %s1505_s24 = sshll.u32 %s2460_s23, 1  ;;  %v316_v24 = vsub.s32 1, %v2013_v18  ;;  %v324_v25 = vsub.s32 3, %v2013_v18  ;;  %v320_v28 = vsub.s32 2, %v2013_v18  ;;  %v332_v29 = vsub.s32 5, %v2013_v18  ;;  %s272_s23 = sand.u32 1, %s1868_s27  }
  0x1e   : > { %1651 = vset.pattern.permute.xlu0 %v1879_v5  ;;  %387 = vperm.xlu1 %1648, %v286_v4   ;;  %s279_s9 = scalar_lea.vmem %s2432_s0, %s1505_s24  ;;  %2447 = vst [vmem:[#allocation7_spill] sm:$0xff] %v2021_v21  ;;  %v340_v30 = vsub.s32 7, %v2013_v18  ;;  %s1503_s24 = sshll.u32 %s272_s23, 3 }
  0x1f   : > { %291 = vperm.xlu0 %1651, %v285_v2   ;;  %v1506_v22 = vld [vmem:[%s279_s9 + $0x1] ss:$2 sm:$0xff]  ;;  %v282_v23 = vld [vmem:[%s279_s9] ss:$2 sm:$0xff]  ;;  %s274_s30 = scalar_lea.vmem [#allocation3], %s1503_s24  ;;  %s1426_s16 = scalar_lea.sflag [#allocation4], %s272_s23 }
  0x20   : > { %v2028_v31 = vrot.slane %v1506_v22, %v328_v19  ;;  %v2030_v32 = vrot.slane %v1506_v22, %v336_v20  ;;  %v2032_v33 = vrot.slane %v282_v23, %v328_v19  ;;  %v2034_v34 = vrot.slane %v282_v23, %v336_v20  ;;  %s1440_s9 = sshll.u32 %s274_s30, 4  ;;  %s1818_s18 = sshll.u32 %s1882_s6, 4  ;;  %s2392_s9 = int_to_ptr.vmem [resolvable:$true] %s1440_s9  ;;  %s1819_s18 = int_to_ptr.vmem [resolvable:$false] %s1818_s18 }
  0x21   : > { %v2037_v35 = vrot.slane %v282_v23, %v2021_v21  ;;  %v2040_v36 = vrot.slane %v1506_v22, %v2021_v21  ;;  %v2042_v37 = vrot.slane %v1506_v22, %v316_v24  ;;  %v2044_v38 = vrot.slane %v1506_v22, %v324_v25  ;;  %s1814_s17 = scalar_lea.vmem %s2392_s9, 128  ;;  %s1820_s19 = scalar_lea.vmem %s1819_s18, 256 }
  0x22   : > { %1649 = vset.pattern.permute.xlu1 %v1879_v5  ;;  %v2046_v40 = vrot.slane %v282_v23, %v316_v24  ;;  %v2048_v41 = vrot.slane %v282_v23, %v324_v25  ;;  %v2050_v42 = vrot.slane %v282_v23, %v320_v28  ;;  %v2052_v43 = vrot.slane %v1506_v22, %v320_v28  ;;  %p1815_p11 = scmp.ne.s32.totalorder %s2392_s9, %s1814_s17  ;;  %p1821_p0 = scmp.lt.s32.totalorder %s2392_s9, %s1819_s18 }
  0x23   : > { %296 = vperm.xlu0 %1651, %v286_v4   ;;  %306 = vperm.xlu1 %1649, %v288_v6   ;;  %v2054_v45 = vrot.slane %v282_v23, %v332_v29  ;;  %v2056_v46 = vrot.slane %v1506_v22, %v332_v29  ;;  %v2058_v47 = vrot.slane %v282_v23, %v340_v30  ;;  %p1822_p1 = scmp.lt.s32.totalorder %s1820_s19, %s1814_s17 }
  0x24   : > { %v2060_v48 = vrot.slane %v1506_v22, %v340_v30  ;;  %p1816_p12 = pnand %p1815_p11, %p1964_p5 }
  0x25   : > { %p1823_p2 = por %p1822_p1, %p1821_p0 }
  0x26   : > { %p1817_p13 = pneg %p1816_p12 }
  0x27   : > { %301 = vperm.xlu0 %1651, %v287_v1   ;;  %1652 = vset.pattern.permute.xlu1 %v1878_v3 }
  0x28   : > { %395 = vperm.xlu1 %1652, %v288_v6   ;;  %p1824_p3 = pnand %p1823_p2, %p1817_p13 }
  0x2b   : > { %514 = vperm.xlu0 %1651, %v504_v7  }
  0x2c   : > { %1653 = vset.pattern.permute.xlu1 %v1879_v5 }
  0x2d   : > { %509 = vperm.xlu1 %1653, %v503_v8  }
  0x2f   : > { %601 = vperm.xlu0 %1651, %v595_v9  }
  0x31   : > { %519 = vperm.xlu1 %1653, %v505_v10  }
  0x33   : > { %611 = vperm.xlu0 %1651, %v597_v11  }
  0x35   : > { %524 = vperm.xlu1 %1653, %v506_v12  }
  0x37   : > { %1024 = vperm.xlu0 %1651, %v1021_v13  }
  0x39   : > { %606 = vperm.xlu1 %1653, %v596_v14  }
  0x3d   : > { %616 = vperm.xlu1 %1653, %v598_v15  }
  0x99   : > { %v384_v26 = vpop.permute.xlu1 %383  ;;  %v392_v27 = vpop.permute.xlu0 %391 }
  0x9a   : > { %v2063_v49 = vmul.f32 %v2028_v31, %v384_v26  ;;  %v2066_v50 = vmul.f32 %v2030_v32, %v384_v26  ;;  %v2069_v51 = vmul.f32 %v2028_v31, %v392_v27  ;;  %v2072_v52 = vmul.f32 %v2030_v32, %v392_v27 }
  0x9b   : > { %v2075_v53 = vmul.f32 %v2040_v36, %v392_v27  ;;  %v440_v54 = vmul.f32 %v2042_v37, %v384_v26  ;;  %v442_v55 = vmul.f32 %v2044_v38, %v384_v26  ;;  %v439_v56 = vmul.f32 %v2040_v36, %v384_v26 }
  0x9c   : > { %2448 = vst [vmem:[#allocation8_spill] sm:$0xff] %v2072_v52  ;;  %v441_v57 = vmul.f32 %v2052_v43, %v384_v26  ;;  %v2082_v58 = vmul.f32 %v2042_v37, %v392_v27  ;;  %v2085_v59 = vmul.f32 %v2044_v38, %v392_v27  ;;  %v2088_v60 = vmul.f32 %v2052_v43, %v392_v27 }
  0x9d   : > { %v388_v39 = vpop.permute.xlu1 %387  ;;  %v2097_v1 = vmul.f32 %v2056_v46, %v384_v26  ;;  %v2100_v2 = vmul.f32 %v2060_v48, %v384_v26  ;;  %v2107_v5 = vmul.f32 %v2056_v46, %v392_v27  ;;  %v2110_v6 = vmul.f32 %v2060_v48, %v392_v27 }
  0x9e   : > { %v292_v44 = vpop.permute.xlu0 %291  ;;  %v2103_v3 = vmul.f32 %v2028_v31, %v388_v39  ;;  %v2113_v7 = vmul.f32 %v2030_v32, %v388_v39  ;;  %v448_v8 = vmul.f32 %v2042_v37, %v388_v39  ;;  %v450_v9 = vmul.f32 %v2044_v38, %v388_v39 }
  0x9f   : > { %v351_v63 = vmul.f32 %v2046_v40, %v292_v44  ;;  %v353_v0 = vmul.f32 %v2048_v41, %v292_v44  ;;  %v350_v4 = vmul.f32 %v2037_v35, %v292_v44  ;;  %v352_v10 = vmul.f32 %v2050_v42, %v292_v44 }
  0xa0   : > { %v2119_v11 = vmul.f32 %v2032_v33, %v292_v44  ;;  %v2122_v12 = vmul.f32 %v2034_v34, %v292_v44  ;;  %v447_v20 = vmul.f32 %v2040_v36, %v388_v39  ;;  %v449_v22 = vmul.f32 %v2052_v43, %v388_v39 }
  0xa1   : > { %v472_v17 = vadd.f32 %v440_v54, %v351_v63  ;;  %v474_v19 = vadd.f32 %v442_v55, %v353_v0  ;;  %v471_v25 = vadd.f32 %v439_v56, %v350_v4  ;;  %v2137_v26 = vmul.f32 %v2054_v45, %v292_v44 }
  0xa2   : > { %v2090_v61 = vpop.permute.xlu0 %296  ;;  %v2092_v62 = vpop.permute.xlu1 %306  ;;  %v2140_v27 = vmul.f32 %v2056_v46, %v388_v39  ;;  %v473_v29 = vadd.f32 %v441_v57, %v352_v10  ;;  %v2145_v30 = vmul.f32 %v2058_v47, %v292_v44  ;;  %v2148_v54 = vmul.f32 %v2060_v48, %v388_v39 }
  0xa3   : > { %v359_v13 = vmul.f32 %v2046_v40, %v2090_v61  ;;  %v361_v14 = vmul.f32 %v2048_v41, %v2090_v61  ;;  %v358_v24 = vmul.f32 %v2037_v35, %v2090_v61  ;;  %v360_v28 = vmul.f32 %v2050_v42, %v2090_v61 }
  0xa4   : > { %v2152_v55 = vmul.f32 %v2032_v33, %v2090_v61  ;;  %v2156_v56 = vmul.f32 %v2034_v34, %v2090_v61  ;;  %v2160_v4 = vmul.f32 %v2032_v33, %v2092_v62  ;;  %v374_v39 = vmul.f32 %v2037_v35, %v2092_v62 }
  0xa5   : > { %v480_v63 = vadd.f32 %v448_v8, %v359_v13  ;;  %v482_v0 = vadd.f32 %v450_v9, %v361_v14  ;;  %v375_v44 = vmul.f32 %v2046_v40, %v2092_v62  ;;  %v377_v10 = vmul.f32 %v2048_v41, %v2092_v62 }
  0xa6   : > { %v2128_v15 = vpop.permute.xlu0 %301  ;;  %2449 = vst [vmem:[#allocation9_spill] sm:$0xff] %v2160_v4  ;;  %v479_v9 = vadd.f32 %v447_v20, %v358_v24  ;;  %v481_v52 = vadd.f32 %v449_v22, %v360_v28  ;;  %v376_v28 = vmul.f32 %v2050_v42, %v2092_v62 }
  0xa7   : > { %v2132_v23 = vpop.permute.xlu1 %395  ;;  %v367_v13 = vmul.f32 %v2046_v40, %v2128_v15  ;;  %v366_v18 = vmul.f32 %v2037_v35, %v2128_v15  ;;  %v369_v4 = vmul.f32 %v2048_v41, %v2128_v15 }
  0xa8   : > { %v463_v21 = vmul.f32 %v2040_v36, %v2132_v23  ;;  %v464_v35 = vmul.f32 %v2042_v37, %v2132_v23  ;;  %v466_v36 = vmul.f32 %v2044_v38, %v2132_v23  ;;  %v465_v37 = vmul.f32 %v2052_v43, %v2132_v23 }
  0xa9   : > { %v488_v41 = vadd.f32 %v2082_v58, %v367_v13  ;;  %v363_v58 = vmul.f32 %v2054_v45, %v2090_v61 }
  0xaa   : > { %v2162_v57 = vpop.permute.xlu0 %514 }
  0xab   : > { %v536_v16 = vadd.f32 %v2162_v57, %v480_v63  ;;  %v538_v8 = vadd.f32 %v2162_v57, %v482_v0  ;;  %v535_v40 = vadd.f32 %v2162_v57, %v479_v9  ;;  %v498_v0 = vadd.f32 %v466_v36, %v377_v10 }
  0xac   : > { %v2174_v14 = vpop.permute.xlu1 %509  ;;  %v484_v10 = vadd.f32 %v2140_v27, %v363_v58  ;;  %v483_v36 = vadd.f32 %v2103_v3, %v2152_v55 }
  0xad   : > { %v528_v63 = vadd.f32 %v2174_v14, %v472_v17  ;;  %1654 = vtanh.f32 %v536_v16  ;;  %v530_v20 = vadd.f32 %v2174_v14, %v474_v19  ;;  %v527_v24 = vadd.f32 %v2174_v14, %v471_v25 }
  0xae   : > { %1656 = vtanh.f32 %v538_v8  ;;  %v529_v22 = vadd.f32 %v2174_v14, %v473_v29  ;;  %v368_v16 = vmul.f32 %v2050_v42, %v2128_v15  ;;  %v537_v19 = vadd.f32 %v2162_v57, %v481_v52 }
  0xaf   : > { %1658 = vtanh.f32 %v528_v63  ;;  %v490_v25 = vadd.f32 %v2085_v59, %v369_v4  ;;  %v2207_v29 = vmul.f32 %v2032_v33, %v2128_v15  ;;  %v2211_v52 = vmul.f32 %v2034_v34, %v2128_v15 }
  0xb0   : > { %v2194_v17 = vpop.permute.xlu1 %519  ;;  %1660 = vtanh.f32 %v530_v20  ;;  %v496_v59 = vadd.f32 %v464_v35, %v375_v44  ;;  %v487_v4 = vadd.f32 %v2075_v53, %v366_v18  ;;  %v495_v8 = vadd.f32 %v463_v21, %v374_v39 }
  0xb1   : > { %1662 = vtanh.f32 %v527_v24  ;;  %v544_v38 = vadd.f32 %v2194_v17, %v488_v41  ;;  %v546_v43 = vadd.f32 %v2194_v17, %v490_v25  ;;  %v489_v9 = vadd.f32 %v2088_v60, %v368_v16 }
  0xb2   : > { %1664 = vtanh.f32 %v535_v40  ;;  %v497_v33 = vadd.f32 %v465_v37, %v376_v28  ;;  %v543_v20 = vadd.f32 %v2194_v17, %v487_v4  ;;  %v476_v18 = vadd.f32 %v2097_v1, %v2137_v26 }
  0xb3   : > { %1666 = vtanh.f32 %v529_v22  ;;  %v365_v53 = vmul.f32 %v2058_v47, %v2090_v61  ;;  %v2228_v60 = vmul.f32 %v2028_v31, %v2132_v23  ;;  %v545_v39 = vadd.f32 %v2194_v17, %v489_v9 }
  0xb4   : > { %v2215_v42 = vpop.permute.xlu1 %524  ;;  %1668 = vtanh.f32 %v537_v19  ;;  %v532_v35 = vadd.f32 %v2174_v14, %v476_v18  ;;  %v478_v1 = vadd.f32 %v2100_v2, %v2145_v30  ;;  %v540_v26 = vadd.f32 %v2162_v57, %v484_v10  ;;  %v2450_v18 = vld [vmem:[#allocation9_spill] sm:$0xff] }
  0xb5   : > { %v552_v13 = vadd.f32 %v2215_v42, %v496_v59  ;;  %1670 = vtanh.f32 %v544_v38  ;;  %v554_v63 = vadd.f32 %v2215_v42, %v498_v0  ;;  %v551_v44 = vadd.f32 %v2215_v42, %v495_v8 }
  0xb6   : > { %1672 = vtanh.f32 %v546_v43  ;;  %v553_v40 = vadd.f32 %v2215_v42, %v497_v33  ;;  %v475_v31 = vadd.f32 %v2063_v49, %v2119_v11  ;;  %v486_v41 = vadd.f32 %v2148_v54, %v365_v53 }
  0xb7   : > { %v1655_v21 = vpop.eup %1654  ;;  %1674 = vtanh.f32 %v552_v13  ;;  %v534_v16 = vadd.f32 %v2174_v14, %v478_v1  ;;  %v371_v30 = vmul.f32 %v2054_v45, %v2128_v15  ;;  %v539_v3 = vadd.f32 %v2162_v57, %v483_v36 }
  0xb8   : > { %v1657_v24 = vpop.eup %1656  ;;  %1676 = vtanh.f32 %v554_v63  ;;  %v531_v2 = vadd.f32 %v2174_v14, %v475_v31  ;;  %v542_v49 = vadd.f32 %v2162_v57, %v486_v41  ;;  %v468_v11 = vmul.f32 %v2056_v46, %v2132_v23 }
  0xb9   : > { %v1659_v61 = vpop.eup %1658  ;;  %1678 = vtanh.f32 %v543_v20  ;;  %v477_v38 = vadd.f32 %v2066_v50, %v2122_v12  ;;  %v373_v28 = vmul.f32 %v2058_v47, %v2128_v15  ;;  %v485_v43 = vadd.f32 %v2113_v7, %v2156_v56 }
  0xba   : > { %v1661_v27 = vpop.eup %1660  ;;  %v1541_v22 = vpack.c.bf16 %v1655_v21, %v1659_v61  ;;  %1680 = vtanh.f32 %v551_v44  ;;  %v379_v59 = vmul.f32 %v2054_v45, %v2092_v62  ;;  %v470_v46 = vmul.f32 %v2060_v48, %v2132_v23 }
  0xbb   : > { %v1663_v19 = vpop.eup %1662  ;;  %v1549_v25 = vpack.c.bf16 %v1657_v24, %v1661_v27  ;;  %1682 = vtanh.f32 %v545_v39  ;;  %v533_v50 = vadd.f32 %v2174_v14, %v477_v38  ;;  %v492_v12 = vadd.f32 %v2107_v5, %v371_v30  ;;  %v2451_v24 = vld [vmem:[#allocation8_spill] sm:$0xff] }
  0xbc   : > { %v1665_v37 = vpop.eup %1664  ;;  %1542 = vmatprep.subr.bf16.mxu0 %v1541_v22  ;;  %1684 = vtanh.f32 %v553_v40  ;;  %v541_v8 = vadd.f32 %v2162_v57, %v485_v43  ;;  %v500_v9 = vadd.f32 %v468_v11, %v379_v59  ;;  %v381_v7 = vmul.f32 %v2058_v47, %v2092_v62 }
  0xbd   : > { %v1667_v54 = vpop.eup %1666  ;;  %1550 = vmatprep.subr.bf16.mxu1 %v1549_v25  ;;  %v1543_v55 = vpack.c.bf16 %v1665_v37, %v1663_v19  ;;  %1686 = vtanh.f32 %v532_v35  ;;  %v469_v48 = vmul.f32 %v2030_v32, %v2132_v23  ;;  %v548_v56 = vadd.f32 %v2194_v17, %v492_v12  ;;  %v593_v37 = vld [vmem:[%s2435_s3 + $0x10] sm:$0xff] }
  0xbe   : > { %v1669_v58 = vpop.eup %1668  ;;  %1688 = vtanh.f32 %v540_v26  ;;  %v494_v14 = vadd.f32 %v2110_v6, %v373_v28  ;;  %v556_v13 = vadd.f32 %v2215_v42, %v500_v9  ;;  %v502_v57 = vadd.f32 %v470_v46, %v381_v7  ;;  %v594_v28 = vld [vmem:[%s2435_s3 + $0x18] sm:$0xff] }
  0xbf   : > { %v1671_v0 = vpop.eup %1670  ;;  %1544 = vmatpush1.bf16.msra.mxu0 %v1543_v55  ;;  %v1551_v4 = vpack.c.bf16 %v1669_v58, %v1667_v54  ;;  %1690 = vtanh.f32 %v534_v16  ;;  %v491_v32 = vadd.f32 %v2069_v51, %v2207_v29  ;;  %v380_v44 = vmul.f32 %v2034_v34, %v2092_v62 }
  0xc0   : > { %v1673_v15 = vpop.eup %1672  ;;  %1692 = vtanh.f32 %v542_v49  ;;  %v550_v47 = vadd.f32 %v2194_v17, %v494_v14  ;;  %v558_v6 = vadd.f32 %v2215_v42, %v502_v57  ;;  %v499_v53 = vadd.f32 %v2228_v60, %v2450_v18  ;;  %v2285_v60 = vld [vmem:[%s2435_s3] sm:$0xff] }
  0xc1   : > { %v1675_v45 = vpop.eup %1674  ;;  %1552 = vmatpush1.bf16.msra.mxu1 %v1551_v4  ;;  %1694 = vtanh.f32 %v531_v2  ;;  %v547_v10 = vadd.f32 %v2194_v17, %v491_v32  ;;  %v493_v51 = vadd.f32 %v2451_v24, %v2211_v52  ;;  %v501_v62 = vadd.f32 %v469_v48, %v380_v44  ;;  %v2334_v4 = vpop.permute.xlu0 %601 }
  0xc2   : > { %v1677_v33 = vpop.eup %1676  ;;  %v1545_v5 = vpack.c.bf16 %v1675_v45, %v1671_v0  ;;  %1696 = vtanh.f32 %v539_v3  ;;  %v555_v34 = vadd.f32 %v2215_v42, %v499_v53  ;;  %v2452_v41 = vmov 0.0   ;;  %v2339_v48 = vpop.permute.xlu1 %606 }
  0xc3   : > { %v1679_v63 = vpop.eup %1678  ;;  %v1553_v20 = vpack.c.bf16 %v1677_v33, %v1673_v15  ;;  %1698 = vtanh.f32 %v533_v50  ;;  %v549_v1 = vadd.f32 %v2194_v17, %v493_v51  ;;  %v557_v52 = vadd.f32 %v2215_v42, %v501_v62  ;;  %v592_v17 = vld [vmem:[%s2435_s3 + $0x8] sm:$0xff] }
  0xc4   : > { %v1681_v23 = vpop.eup %1680  ;;  %1546 = vmatprep.subr.bf16.mxu0 %v1545_v5  ;;  %1700 = vtanh.f32 %v541_v8 }
  0xc5   : > { %v1683_v21 = vpop.eup %1682  ;;  %1554 = vmatprep.subr.bf16.mxu1 %v1553_v20  ;;  %v1547_v39 = vpack.c.bf16 %v1681_v23, %v1679_v63  ;;  %1702 = vtanh.f32 %v548_v56 }
  0xc6   : > { %v1685_v29 = vpop.eup %1684  ;;  %1704 = vtanh.f32 %v556_v13 }
  0xc7   : > { %v1687_v40 = vpop.eup %1686  ;;  %1548 = vmatpush1.bf16.msra.mxu0 %v1547_v39  ;;  %v1555_v35 = vpack.c.bf16 %v1685_v29, %v1683_v21  ;;  %1706 = vtanh.f32 %v550_v47  ;;  %v2345_v47 = vpop.permute.xlu0 %611 }
  0xc8   : > { %v1689_v61 = vpop.eup %1688  ;;  %1708 = vtanh.f32 %v558_v6 }
  0xc9   : > { %v1691_v26 = vpop.eup %1690  ;;  %1556 = vmatpush1.bf16.msra.mxu1 %v1555_v35  ;;  %v1557_v31 = vpack.c.bf16 %v1689_v61, %v1687_v40  ;;  %1710 = vtanh.f32 %v547_v10  ;;  %v2351_v10 = vpop.permute.xlu1 %616 }
  0xca   : > { %v1693_v36 = vpop.eup %1692  ;;  %1507 = vmatmul.mubr.msk.f32.vlgmr.msra.gmra.mrb[0].mxu0 %vm619_vm0, %v2285_v60  ;;  %1712 = vtanh.f32 %v555_v34 }
  0xcb   : > { %v1695_v27 = vpop.eup %1694  ;;  %1558 = vmatprep.subr.bf16.mxu0 %v1557_v31  ;;  %v1565_v22 = vpack.c.bf16 %v1693_v36, %v1691_v26  ;;  %702 = vmatprep.mubr.f32.mxu0 %v2452_v41  ;;  %1714 = vtanh.f32 %v549_v1 }
  0xcc   : > { %v1697_v42 = vpop.eup %1696  ;;  %1511 = vmatmul.mubr.msk.f32.vlgmr.msra.gmra.mrb[0].mxu1 %vm619_vm0, %v2285_v60  ;;  %1716 = vtanh.f32 %v557_v52 }
  0xcd   : > { %v1699_v16 = vpop.eup %1698  ;;  %1566 = vmatprep.subr.bf16.mxu1 %v1565_v22  ;;  %v1559_v19 = vpack.c.bf16 %v1697_v42, %v1695_v27  ;;  %791 = vmatprep.mubr.f32.mxu1 %v2452_v41 }
  0xce   : > { %v1701_v25 = vpop.eup %1700  ;;  %1508 = vmatmul.mubr.msk.f32.gmra.mrb[2].mxu0 %vm619_vm0, %v592_v17 }
  0xcf   : > { %v1703_v2 = vpop.eup %1702  ;;  %1560 = vmatpush1.bf16.msra.mxu0 %v1559_v19  ;;  %v1567_v30 = vpack.c.bf16 %v1701_v25, %v1699_v16  ;;  %708 = vmatprep.mubr.f32.mxu0 %v2452_v41 }
  0xd0   : > { %v1705_v49 = vpop.eup %1704  ;;  %1512 = vmatmul.mubr.msk.f32.gmra.mrb[2].mxu1 %vm619_vm0, %v592_v17 }
  0xd1   : > { %v1707_v3 = vpop.eup %1706  ;;  %1568 = vmatpush1.bf16.msra.mxu1 %v1567_v30  ;;  %v1561_v11 = vpack.c.bf16 %v1705_v49, %v1703_v2  ;;  %797 = vmatprep.mubr.f32.mxu1 %v2452_v41 }
  0xd2   : > { %v1709_v54 = vpop.eup %1708  ;;  %1509 = vmatmul.mubr.msk.f32.gmra.mrb[4].mxu0 %vm619_vm0, %v593_v37 }
  0xd3   : > { %v1711_v55 = vpop.eup %1710  ;;  %1562 = vmatprep.subr.bf16.mxu0 %v1561_v11  ;;  %v1569_v38 = vpack.c.bf16 %v1709_v54, %v1707_v3  ;;  %714 = vmatprep.mubr.f32.mxu0 %v2452_v41 }
  0xd4   : > { %v1713_v58 = vpop.eup %1712  ;;  %1513 = vmatmul.mubr.msk.f32.gmra.mrb[4].mxu1 %vm619_vm0, %v593_v37 }
  0xd5   : > { %v1715_v43 = vpop.eup %1714  ;;  %1570 = vmatprep.subr.bf16.mxu1 %v1569_v38  ;;  %v1563_v59 = vpack.c.bf16 %v1713_v58, %v1711_v55  ;;  %803 = vmatprep.mubr.f32.mxu1 %v2452_v41 }
  0xd6   : > { %v1717_v46 = vpop.eup %1716  ;;  %1510 = vmatmul.mubr.msk.f32.gmra.mrb[6].mxu0 %vm619_vm0, %v594_v28 }
  0xd7   : > { %1564 = vmatpush1.bf16.msra.mxu0 %v1563_v59  ;;  %v1571_v0 = vpack.c.bf16 %v1717_v46, %v1715_v43  ;;  %874 = vmatprep.mubr.f32.mxu0 %v2452_v41 }
  0xd8   : > { %1514 = vmatmul.mubr.msk.f32.gmra.mrb[6].mxu1 %vm619_vm0, %v594_v28 }
  0xd9   : > { %1572 = vmatpush1.bf16.msra.mxu1 %v1571_v0  ;;  %963 = vmatprep.mubr.f32.mxu1 %v2452_v41 }
  0xda   : > { %1515 = vmatmul.mubr.msk.f32.vlgmr.msra.gmra.mrb[8].mxu0 %vm619_vm0, %v2285_v60 }
  0xdb   : > { %880 = vmatprep.mubr.f32.mxu0 %v2452_v41 }
  0xdc   : > { %1519 = vmatmul.mubr.msk.f32.vlgmr.msra.gmra.mrb[8].mxu1 %vm619_vm0, %v2285_v60 }
  0xdd   : > { %969 = vmatprep.mubr.f32.mxu1 %v2452_v41 }
  0xde   : > { %1516 = vmatmul.mubr.msk.f32.gmra.mrb[10].mxu0 %vm619_vm0, %v592_v17 }
  0xdf   : > { %886 = vmatprep.mubr.f32.mxu0 %v2452_v41 }
  0xe0   : > { %1520 = vmatmul.mubr.msk.f32.gmra.mrb[10].mxu1 %vm619_vm0, %v592_v17 }
  0xe1   : > { %975 = vmatprep.mubr.f32.mxu1 %v2452_v41 }
  0xe2   : > { %1517 = vmatmul.mubr.msk.f32.gmra.mrb[12].mxu0 %vm619_vm0, %v593_v37 }
  0xe3   : > { %892 = vmatprep.mubr.f32.mxu0 %v2452_v41 }
  0xe4   : > { %1521 = vmatmul.mubr.msk.f32.gmra.mrb[12].mxu1 %vm619_vm0, %v593_v37 }
  0xe5   : > { %981 = vmatprep.mubr.f32.mxu1 %v2452_v41 }
  0xe6   : > { %1518 = vmatmul.mubr.msk.f32.gmra.mrb[14].mxu0 %vm619_vm0, %v594_v28 }
  0xe7   : > { %1098 = vmatprep.mubr.f32.mxu0 %v2452_v41 }
  0xe8   : > { %1522 = vmatmul.mubr.msk.f32.gmra.mrb[14].mxu1 %vm619_vm0, %v594_v28 }
  0xe9   : > { %1169 = vmatprep.mubr.f32.mxu1 %v2452_v41 }
 0x19d   : > { %v698_v50 = vpop.f32.mrb[0].mxu0 }
 0x19e   : > { %v699_v12 = vadd.f32 %v698_v50, %v2334_v4  ;;  %v700_v15 = vpop.f32.mrb[1].mxu0 }
 0x19f   : > { %v787_v8 = vpop.f32.mrb[0].mxu1  ;;  %v701_v9 = vadd.f32 %v700_v15, %v2334_v4 }
 0x1a0   : > { %1718 = vtanh.f32 %v699_v12  ;;  %v788_v7 = vadd.f32 %v787_v8, %v2334_v4  ;;  %v789_v45 = vpop.f32.mrb[1].mxu1 }
 0x1a1   : > { %1720 = vtanh.f32 %v701_v9  ;;  %v790_v56 = vadd.f32 %v789_v45, %v2334_v4  ;;  %v704_v14 = vpop.f32.mrb[2].mxu0 }
 0x1a2   : > { %1722 = vtanh.f32 %v788_v7  ;;  %v705_v33 = vadd.f32 %v704_v14, %v2339_v48  ;;  %v706_v5 = vpop.f32.mrb[3].mxu0 }
 0x1a3   : > { %1724 = vtanh.f32 %v790_v56  ;;  %v793_v13 = vpop.f32.mrb[2].mxu1  ;;  %v707_v57 = vadd.f32 %v706_v5, %v2339_v48 }
 0x1a4   : > { %1726 = vtanh.f32 %v705_v33  ;;  %v794_v63 = vadd.f32 %v793_v13, %v2339_v48  ;;  %v795_v20 = vpop.f32.mrb[3].mxu1 }
 0x1a5   : > { %1728 = vtanh.f32 %v707_v57  ;;  %v796_v32 = vadd.f32 %v795_v20, %v2339_v48  ;;  %v710_v23 = vpop.f32.mrb[4].mxu0 }
 0x1a6   : > { %1730 = vtanh.f32 %v794_v63  ;;  %v711_v44 = vadd.f32 %v710_v23, %v2345_v47  ;;  %v712_v6 = vpop.f32.mrb[5].mxu0 }
 0x1a7   : > { %1732 = vtanh.f32 %v796_v32  ;;  %v799_v18 = vpop.f32.mrb[4].mxu1  ;;  %v713_v53 = vadd.f32 %v712_v6, %v2345_v47 }
 0x1a8   : > { %1734 = vtanh.f32 %v711_v44  ;;  %v800_v21 = vadd.f32 %v799_v18, %v2345_v47  ;;  %v801_v39 = vpop.f32.mrb[5].mxu1 }
 0x1a9   : > { %1736 = vtanh.f32 %v713_v53  ;;  %v802_v24 = vadd.f32 %v801_v39, %v2345_v47  ;;  %v716_v51 = vpop.f32.mrb[6].mxu0 }
 0x1aa   : > { %v1719_v29 = vpop.eup %1718  ;;  %1738 = vtanh.f32 %v800_v21  ;;  %v717_v34 = vadd.f32 %v716_v51, %v2351_v10  ;;  %v718_v62 = vpop.f32.mrb[7].mxu0 }
 0x1ab   : > { %v1721_v40 = vpop.eup %1720  ;;  %1740 = vtanh.f32 %v802_v24  ;;  %v805_v35 = vpop.f32.mrb[6].mxu1  ;;  %v719_v60 = vadd.f32 %v718_v62, %v2351_v10 }
 0x1ac   : > { %v1723_v1 = vpop.eup %1722  ;;  %1742 = vtanh.f32 %v717_v34  ;;  %v806_v61 = vadd.f32 %v805_v35, %v2351_v10  ;;  %v807_v52 = vpop.f32.mrb[7].mxu1  ;;  %v1020_v34 = vld [vmem:[%s2437_s5] sm:$0x1] }
 0x1ad   : > { %v1725_v26 = vpop.eup %1724  ;;  %1744 = vtanh.f32 %v719_v60  ;;  %v808_v31 = vadd.f32 %v807_v52, %v2351_v10  ;;  %v876_v36 = vpop.f32.mrb[8].mxu0 }
 0x1ae   : > { %v1727_v27 = vpop.eup %1726  ;;  %1746 = vtanh.f32 %v806_v61  ;;  %v877_v22 = vadd.f32 %v876_v36, %v2334_v4  ;;  %v878_v17 = vpop.f32.mrb[9].mxu0 }
 0x1af   : > { %v1729_v42 = vpop.eup %1728  ;;  %1748 = vtanh.f32 %v808_v31  ;;  %v965_v16 = vpop.f32.mrb[8].mxu1  ;;  %v879_v19 = vadd.f32 %v878_v17, %v2334_v4  ;;  %v1575_v25 = vpack.c.bf16 %v1727_v27, %v1719_v29 }
 0x1b0   : > { %v1731_v2 = vpop.eup %1730  ;;  %1750 = vtanh.f32 %v877_v22  ;;  %v966_v30 = vadd.f32 %v965_v16, %v2334_v4  ;;  %v967_v37 = vpop.f32.mrb[9].mxu1  ;;  %v1573_v49 = vpack.c.bf16 %v1729_v42, %v1721_v40 }
 0x1b1   : > { %v1733_v3 = vpop.eup %1732  ;;  %1752 = vtanh.f32 %v879_v19  ;;  %v968_v11 = vadd.f32 %v967_v37, %v2334_v4  ;;  %v882_v54 = vpop.f32.mrb[10].mxu0  ;;  %v1583_v55 = vpack.c.bf16 %v1731_v2, %v1723_v1 }
 0x1b2   : > { %v1735_v38 = vpop.eup %1734  ;;  %1754 = vtanh.f32 %v966_v30  ;;  %v883_v28 = vadd.f32 %v882_v54, %v2339_v48  ;;  %v884_v58 = vpop.f32.mrb[11].mxu0  ;;  %1574 = vmatprep.subr.bf16.mxu0 %v1573_v49  ;;  %v1581_v43 = vpack.c.bf16 %v1733_v3, %v1725_v26  ;;  %v2453_v54 = vld [vmem:[#allocation7_spill] sm:$0xff] }
 0x1b3   : > { %v1737_v59 = vpop.eup %1736  ;;  %1756 = vtanh.f32 %v968_v11  ;;  %v971_v46 = vpop.f32.mrb[10].mxu1  ;;  %v885_v0 = vadd.f32 %v884_v58, %v2339_v48  ;;  %1576 = vmatpush1.bf16.msra.mxu0 %v1575_v25 }
 0x1b4   : > { %v1739_v50 = vpop.eup %1738  ;;  %1758 = vtanh.f32 %v883_v28  ;;  %v972_v12 = vadd.f32 %v971_v46, %v2339_v48  ;;  %v973_v4 = vpop.f32.mrb[11].mxu1  ;;  %1582 = vmatprep.subr.bf16.mxu1 %v1581_v43 }
 0x1b5   : > { %v1741_v15 = vpop.eup %1740  ;;  %1760 = vtanh.f32 %v885_v0  ;;  %v974_v8 = vadd.f32 %v973_v4, %v2339_v48  ;;  %1584 = vmatpush1.bf16.msra.mxu1 %v1583_v55  ;;  %v888_v9 = vpop.f32.mrb[12].mxu0 }
 0x1b6   : > { %v1743_v7 = vpop.eup %1742  ;;  %1762 = vtanh.f32 %v972_v12  ;;  %v889_v45 = vadd.f32 %v888_v9, %v2345_v47  ;;  %v890_v56 = vpop.f32.mrb[13].mxu0 }
 0x1b7   : > { %v1745_v14 = vpop.eup %1744  ;;  %1764 = vtanh.f32 %v974_v8  ;;  %v977_v33 = vpop.f32.mrb[12].mxu1  ;;  %v891_v5 = vadd.f32 %v890_v56, %v2345_v47  ;;  %v1579_v13 = vpack.c.bf16 %v1743_v7, %v1735_v38 }
 0x1b8   : > { %v1747_v57 = vpop.eup %1746  ;;  %1766 = vtanh.f32 %v889_v45  ;;  %v978_v63 = vadd.f32 %v977_v33, %v2345_v47  ;;  %v979_v20 = vpop.f32.mrb[13].mxu1  ;;  %v1577_v32 = vpack.c.bf16 %v1745_v14, %v1737_v59 }
 0x1b9   : > { %v1749_v48 = vpop.eup %1748  ;;  %1768 = vtanh.f32 %v891_v5  ;;  %v980_v23 = vadd.f32 %v979_v20, %v2345_v47  ;;  %v894_v44 = vpop.f32.mrb[14].mxu0  ;;  %v1587_v6 = vpack.c.bf16 %v1747_v57, %v1739_v50 }
 0x1ba   : > { %v1751_v18 = vpop.eup %1750  ;;  %1770 = vtanh.f32 %v978_v63  ;;  %v895_v53 = vadd.f32 %v894_v44, %v2351_v10  ;;  %v896_v21 = vpop.f32.mrb[15].mxu0  ;;  %1578 = vmatprep.subr.bf16.mxu0 %v1577_v32  ;;  %v1585_v39 = vpack.c.bf16 %v1749_v48, %v1741_v15 }
 0x1bb   : > { %v1753_v24 = vpop.eup %1752  ;;  %1772 = vtanh.f32 %v980_v23  ;;  %v983_v51 = vpop.f32.mrb[14].mxu1  ;;  %v897_v29 = vadd.f32 %v896_v21, %v2351_v10  ;;  %1580 = vmatpush1.bf16.msra.mxu0 %v1579_v13  ;;  %v1881_v21 = vmov 1966171168  }
 0x1bc   : > { %v1755_v47 = vpop.eup %1754  ;;  %1774 = vtanh.f32 %v895_v53  ;;  %v984_v62 = vadd.f32 %v983_v51, %v2351_v10  ;;  %v985_v40 = vpop.f32.mrb[15].mxu1  ;;  %1586 = vmatprep.subr.bf16.mxu1 %v1585_v39  ;;  %v1379_v39 = vunpack.c.l.s4 %v1881_v21 }
 0x1bd   : > { %v1757_v35 = vpop.eup %1756  ;;  %1776 = vtanh.f32 %v897_v29  ;;  %v986_v60 = vadd.f32 %v985_v40, %v2351_v10  ;;  %1588 = vmatpush1.bf16.msra.mxu1 %v1587_v6 }
 0x1be   : > { %v1759_v1 = vpop.eup %1758  ;;  %1778 = vtanh.f32 %v984_v62  ;;  %1523 = vmatmul.mubr.msk.f32.vlgmr.msra.gmra.mrb[16].mxu0 %vm619_vm0, %v1020_v34  ;;  %v1380_v29 = vunpack.c.0.s8 %v1379_v39 }
 0x1bf   : > { %v1761_v61 = vpop.eup %1760  ;;  %1780 = vtanh.f32 %v986_v60  ;;  %v1591_v52 = vpack.c.bf16 %v1759_v1, %v1751_v18  ;;  %1240 = vmatprep.mubr.f32.mxu0 %v2452_v41 }
 0x1c0   : > { %v1763_v26 = vpop.eup %1762  ;;  %1524 = vmatmul.mubr.msk.f32.vlgmr.msra.gmra.mrb[16].mxu1 %vm619_vm0, %v1020_v34  ;;  %v1589_v31 = vpack.c.bf16 %v1761_v61, %v1753_v24 }
 0x1c1   : > { %v1765_v36 = vpop.eup %1764  ;;  %v1599_v27 = vpack.c.bf16 %v1763_v26, %v1755_v47  ;;  %1311 = vmatprep.mubr.f32.mxu1 %v2452_v41  ;;  %v1025_v41 = vpop.permute.xlu0 %1024  ;;  %v2454_v47 = vld [vmem:[#allocation6_spill] sm:$0xff] }
 0x1c2   : > { %v1767_v22 = vpop.eup %1766  ;;  %1590 = vmatprep.subr.bf16.mxu0 %v1589_v31  ;;  %v1597_v10 = vpack.c.bf16 %v1765_v36, %v1757_v35  ;;  %v1030_v55 = vrot.slane %v1025_v41, %v2453_v54  ;;  %v1383_v62 = vsub.s32 %v1380_v29, %v2454_v47 }
 0x1c3   : > { %v1769_v17 = vpop.eup %1768  ;;  %1592 = vmatpush1.bf16.msra.mxu0 %v1591_v52 }
 0x1c4   : > { %v1771_v42 = vpop.eup %1770  ;;  %1598 = vmatprep.subr.bf16.mxu1 %v1597_v10 }
 0x1c5   : > { %v1773_v16 = vpop.eup %1772  ;;  %1600 = vmatpush1.bf16.msra.mxu1 %v1599_v27 }
 0x1c6   : > { %v1775_v19 = vpop.eup %1774 }
 0x1c7   : > { %v1777_v25 = vpop.eup %1776  ;;  %v1595_v2 = vpack.c.bf16 %v1775_v19, %v1767_v22 }
 0x1c8   : > { %v1779_v30 = vpop.eup %1778  ;;  %v1593_v37 = vpack.c.bf16 %v1777_v25, %v1769_v17 }
 0x1c9   : > { %v1781_v49 = vpop.eup %1780  ;;  %v1603_v3 = vpack.c.bf16 %v1779_v30, %v1771_v42 }
 0x1ca   : > { %1594 = vmatprep.subr.bf16.mxu0 %v1593_v37  ;;  %v1601_v11 = vpack.c.bf16 %v1781_v49, %v1773_v16 }
 0x1cb   : > { %1596 = vmatpush1.bf16.msra.mxu0 %v1595_v2 }
 0x1cc   : > { %1602 = vmatprep.subr.bf16.mxu1 %v1601_v11 }
 0x1cd   : > { %1604 = vmatpush1.bf16.msra.mxu1 %v1603_v3 }
 0x1ce   : > { %1525 = vmatmul.mubr.msk.f32.vlgmr.msra.gmra.mrb[18].mxu0 %vm619_vm0, %v1020_v34 }
 0x1d0   : > { %1526 = vmatmul.mubr.msk.f32.vlgmr.msra.gmra.mrb[18].mxu1 %vm619_vm0, %v1020_v34 }
 0x291   : > { %v1100_v38 = vpop.f32.mrb[16].mxu0 }
 0x292   : > { %v1101_v28 = vadd.f32 %v1100_v38, %v1030_v55  ;;  %v1102_v58 = vpop.f32.mrb[17].mxu0 }
 0x293   : > { %v1171_v43 = vpop.f32.mrb[16].mxu1  ;;  %v1103_v59 = vadd.f32 %v1102_v58, %v1030_v55 }
 0x294   : > { %v1527_v46 = vmul.f32 -1.442695, %v1101_v28  ;;  %v1172_v0 = vadd.f32 %v1171_v43, %v1030_v55  ;;  %v1173_v50 = vpop.f32.mrb[17].mxu1 }
 0x295   : > { %v1528_v12 = vmul.f32 -1.442695, %v1103_v59  ;;  %v1174_v4 = vadd.f32 %v1173_v50, %v1030_v55 }
 0x296   : > { %1782 = vpow2.f32 %v1527_v46  ;;  %v1529_v15 = vmul.f32 -1.442695, %v1172_v0 }
 0x297   : > { %1784 = vpow2.f32 %v1528_v12  ;;  %v1530_v8 = vmul.f32 -1.442695, %v1174_v4 }
 0x298   : > { %1786 = vpow2.f32 %v1529_v15 }
 0x299   : > { %1788 = vpow2.f32 %v1530_v8 }
 0x2a0   : > { %v1783_v9 = vpop.eup %1782 }
 0x2a1   : > { %v1785_v7 = vpop.eup %1784  ;;  %v1342_v45 = vadd.f32 1.0, %v1783_v9  ;;  %v1242_v56 = vpop.f32.mrb[18].mxu0 }
 0x2a2   : > { %v1787_v14 = vpop.eup %1786  ;;  %v1343_v33 = vadd.f32 1.0, %v1785_v7  ;;  %v1243_v5 = vadd.f32 %v1242_v56, %v1030_v55  ;;  %v1244_v13 = vpop.f32.mrb[19].mxu0 }
 0x2a3   : > { %v1789_v57 = vpop.eup %1788  ;;  %1790 = vrcp.f32 %v1342_v45  ;;  %v1344_v63 = vadd.f32 1.0, %v1787_v14  ;;  %v1313_v20 = vpop.f32.mrb[18].mxu1  ;;  %v1245_v32 = vadd.f32 %v1244_v13, %v1030_v55 }
 0x2a4   : > { %1792 = vrcp.f32 %v1343_v33  ;;  %v1345_v48 = vadd.f32 1.0, %v1789_v57  ;;  %v1531_v23 = vmul.f32 -1.442695, %v1243_v5  ;;  %v1314_v44 = vadd.f32 %v1313_v20, %v1030_v55  ;;  %v1315_v6 = vpop.f32.mrb[19].mxu1 }
 0x2a5   : > { %1794 = vrcp.f32 %v1344_v63  ;;  %v1532_v18 = vmul.f32 -1.442695, %v1245_v32  ;;  %v1316_v53 = vadd.f32 %v1315_v6, %v1030_v55 }
 0x2a6   : > { %1796 = vrcp.f32 %v1345_v48  ;;  %v1533_v24 = vmul.f32 -1.442695, %v1314_v44 }
 0x2a7   : > { %1798 = vpow2.f32 %v1531_v23  ;;  %v1534_v51 = vmul.f32 -1.442695, %v1316_v53 }
 0x2a8   : > { %1800 = vpow2.f32 %v1533_v24 }
 0x2a9   : > { %1802 = vpow2.f32 %v1532_v18 }
 0x2aa   : > { %1804 = vpow2.f32 %v1534_v51 }
 0x2ad   : > { %v1791_v34 = vpop.eup %1790 }
 0x2ae   : > { %v1793_v40 = vpop.eup %1792 }
 0x2af   : > { %v1795_v35 = vpop.eup %1794  ;;  %v1374_v60 = vcombine.low %v1791_v34, %v1793_v40 }
 0x2b0   : > { %v1797_v1 = vpop.eup %1796 }
 0x2b1   : > { %v1799_v61 = vpop.eup %1798  ;;  %v1375_v52 = vcombine.low %v1795_v35, %v1797_v1  ;;  %v1384_v26 = vrot.slane %v1374_v60, %v1383_v62 }
 0x2b2   : > { %v1801_v31 = vpop.eup %1800  ;;  %v1346_v36 = vadd.f32 1.0, %v1799_v61 }
 0x2b3   : > { %v1803_v27 = vpop.eup %1802  ;;  %v1348_v22 = vadd.f32 1.0, %v1801_v31  ;;  %v1391_v10 = vrot.slane %v1375_v52, %v1383_v62 }
 0x2b4   : > { %v1805_v17 = vpop.eup %1804  ;;  %1806 = vrcp.f32 %v1346_v36  ;;  %v1347_v42 = vadd.f32 1.0, %v1803_v27 }
 0x2b5   : > { %1808 = vrcp.f32 %v1348_v22  ;;  %v1349_v16 = vadd.f32 1.0, %v1805_v17  ;;  %v1406_v19 = vcombine.low %v1384_v26, %v1391_v10 }
 0x2b6   : > { %1810 = vrcp.f32 %v1347_v42 }
 0x2b7   : > { %1812 = vrcp.f32 %v1349_v16  ;;  %v1414_v55 = vrot.slane %v1406_v19, %v1383_v62 }
 0x2be   : > { %v1807_v25 = vpop.eup %1806 }
 0x2bf   : > { %v1809_v2 = vpop.eup %1808 }
 0x2c0   : > { %v1811_v30 = vpop.eup %1810 }
 0x2c1   : > { %v1813_v37 = vpop.eup %1812  ;;  %v1376_v49 = vcombine.low %v1807_v25, %v1811_v30 }
 0x2c2   : > { %v1377_v3 = vcombine.low %v1809_v2, %v1813_v37 }
 0x2c3   : > { %v1398_v11 = vrot.slane %v1376_v49, %v1383_v62 }
 0x2c4   : > { %v1405_v41 = vrot.slane %v1377_v3, %v1383_v62 }
 0x2c6   : > { %v1407_v54 = vcombine.low %v1398_v11, %v1405_v41 }
 0x2c8   : > { %v1421_v38 = vrot.slane %v1407_v54, %v1383_v62 }
 0x2ca   : > { %v1422_v28 = vcombine.low %v1414_v55, %v1421_v38 }
 0x2cc   : > { %1424 = vst [vmem:[%s274_s30] sm:$0xff] %v1422_v28 }
 0x2cd   : > { %1827 = shalt.err (!%p1824_p3)
}
 0x2ce   : > { %s1828_s20 = scalar_lea.hbm %s2390_s15, 128  ;;  %s1832_s23 = scalar_lea.hbm %s2439_s7, 384 }
 0x2cf   : > { %p1829_p4 = scmp.ne.s32.totalorder %s2390_s15, %s1828_s20  ;;  %p1833_p9 = scmp.lt.u32.totalorder %s2390_s15, %s2439_s7 }
 0x2d0   : > { %p1834_p10 = scmp.lt.u32.totalorder %s1832_s23, %s1828_s20  ;;  %p1836_p12 = scmp.lt.u32.totalorder %s1828_s20, %s2390_s15 }
 0x2d1   : > { %p1830_p7 = pnand %p1829_p4, %p1964_p5 }
 0x2d2   : > { %p1835_p11 = por %p1834_p10, %p1833_p9 }
 0x2d3   : > { %p1831_p8 = pneg %p1830_p7 }
 0x2d4   : > { %p1837_p13 = por %p1836_p12, %p1835_p11 }
 0x2d6   : > { %p1838_p0 = pnand %p1837_p13, %p1831_p8 }
 0x2d8   : > { %1841 = shalt.err (!%p1838_p0)
}
 0x2d9   : > { %1605 = dma.vmem_to_hbm [thread:$0]  (%p1964_p5), %s2392_s9, 128, %s2390_s15, %s1426_s16  }
 0x2da PF: > { %p1611_p1 = scmp.ge.s32.totalorder %s1876_s29, 2  ;;  %s1452_s30 = sand.u32 1, %s1864_s26  }
 0x2db   : > { %s1453_s10 = scalar_lea.sflag [#allocation4], %s1452_s30 }
 0x2dc   : > { %p1608_p2 = pnand %p1611_p1, %p1968_p6 }
 0x2de   : > { %1859 = dma.done.wait (!%p1608_p2), %s1453_s10, 128  }
 0x2df   : > { %1861 = vsyncadd (!%p1608_p2), %s1453_s10, 4294967168  ;;  %p19_p3 = scmp.ge.s32.totalorder %s1951_s8, 5   ;;  %s2455_s26 = smov %s1868_s27 }
 0x2e0   : > { %s2456_s27 = smov %s1872_s28  ;;  %s2457_s28 = smov %s1962_s11 }
 0x2e1   : > { %s2458_s29 = smov %s1951_s8  ;;  %21 = sbr.rel (!%p19_p3) target bundleno = 6 (0x6), region = 84 }
 0x2e8   :  { %1458 = vsyncpa [#allocation4], 1 }
 0x2e9   :  { %1460 = vsyncpa [#allocation4 + $0x1], 1 }

</bundles_post_ra>
